<compile_context>
chip_gen: v7x
topology: tpu7x:2x2x1
jax: 0.10.0
libtpu: 0.0.40
codegen_flags: <defaults>
</compile_context>

<pallas_src>
import jax
import jax.numpy as jnp
from jax.experimental import pallas as pl
from jax.experimental.pallas import tpu as pltpu

IN_F, HID_F, OUT_F = 2, 4, 1   # logical dims from nn.Linear(2,4) / nn.Linear(4,1)
LANES = 128                    # lane width; batch elements live in lanes
MAX_TB = 64 * 1024             # batch-tile cap (~5.6 MiB/step, < 32 MiB v7x scoped VMEM)


def _cdiv(a, b):
    return (a + b - 1) // b


def _round_up(n, m):
    return ((n + m - 1) // m) * m


def _mlp_kernel(x_ref, p_ref, o_ref):
    # x_ref: (2, TB)   batch tile, batch in lanes; row 0 = feature 0, row 1 = feature 1
    # p_ref: (8, 128)  packed params (VMEM-resident across the whole grid):
    #                    lane 0: W1[:, 0] in sublanes 0..3, lane 1: W1[:, 1],
    #                    lane 2: b1, lane 3: W2[0, :], (0, 4): b2; rest zero
    # o_ref: (1, TB)   lane-dense output tile
    x0 = x_ref[0:1, :]                    # (1, TB)
    x1 = x_ref[1:2, :]                    # (1, TB)

    w1c0 = p_ref[:, 0:1]                  # (8, 1)  weights hitting feature 0
    w1c1 = p_ref[:, 1:2]                  # (8, 1)  weights hitting feature 1
    b1c = p_ref[:, 2:3]                   # (8, 1)
    w2c = p_ref[:, 3:4]                   # (8, 1)
    b2 = p_ref[0:1, 4:5]                  # (1, 1)

    # Layer 1 (VPU): hidden units in sublanes 0..3, batch in lanes.
    # Padded sublanes have zero weights/bias -> relu(0) = 0.
    h = jnp.maximum(w1c0 * x0 + w1c1 * x1 + b1c, 0.0)        # (8, TB), f32
    # Layer 2: scale by w2 (zero in padded sublanes), 8-sublane reduce, add bias.
    y = jnp.sum(w2c * h, axis=0, keepdims=True) + b2          # (1, TB)
    o_ref[...] = y


def pack_params(w1, b1, w2, b2):
    """One-time packing of PyTorch-layout params into an (8, 128) f32 slab."""
    p = jnp.zeros((8, LANES), dtype=jnp.float32)
    p = p.at[:HID_F, 0].set(w1[:, 0].astype(jnp.float32))    # W1 column for input 0
    p = p.at[:HID_F, 1].set(w1[:, 1].astype(jnp.float32))    # W1 column for input 1
    p = p.at[:HID_F, 2].set(b1.astype(jnp.float32))          # b1
    p = p.at[:HID_F, 3].set(w2[0, :].astype(jnp.float32))    # W2 row (over hidden)
    p = p.at[0, 4].set(b2[0].astype(jnp.float32))            # b2
    return p


def _choose_tile(B):
    if B <= LANES:
        # Tiny batch: single full-array block (always layout-legal, grid = 1).
        return B
    # Lane-aligned tile; aim for >= 2 grid steps (v7x has 2 TCs), cap at MAX_TB.
    return min(MAX_TB, _round_up(_cdiv(B, 2), LANES))


@jax.jit
def simple_nn_forward(x, packed_params):
    """x: (B, 2) float32; packed_params: (8, 128) from pack_params(). Returns (B, 1)."""
    B = x.shape[0]
    x_t = x.astype(jnp.float32).T                  # (2, B): one-time layout plumbing
    tb = _choose_tile(B)
    grid = (_cdiv(B, tb),)                         # ragged last tile handled by Pallas

    flops = 28 * B                                 # 4 hidden * (2 FMA) + relu + 4 FMA out
    bytes_accessed = 4 * (IN_F * B + OUT_F * B + 8 * LANES)

    out = pl.pallas_call(
        _mlp_kernel,
        out_shape=jax.ShapeDtypeStruct((OUT_F, B), jnp.float32),
        grid=grid,
        in_specs=[
            pl.BlockSpec((IN_F, tb), lambda i: (0, i)),     # stream x batch tiles (lane-dense)
            pl.BlockSpec((8, LANES), lambda i: (0, 0)),     # params: resident, one DMA
        ],
        out_specs=pl.BlockSpec((OUT_F, tb), lambda i: (0, i)),  # lane-dense output row
        compiler_params=pltpu.CompilerParams(
            dimension_semantics=("parallel",),              # shard batch across TCs (v7x)
        ),
        cost_estimate=pl.CostEstimate(
            flops=flops, transcendentals=0, bytes_accessed=bytes_accessed),
    )(x_t, packed_params)

    return out.reshape(B, OUT_F)                   # (1, B) -> (B, 1): free reshape, no slice


def init_params(key):
    """Deterministic init mimicking nn.Linear defaults (uniform +-1/sqrt(fan_in))."""
    k1, k2, k3, k4 = jax.random.split(key, 4)
    lim1 = 1.0 / jnp.sqrt(float(IN_F))
    lim2 = 1.0 / jnp.sqrt(float(HID_F))
    w1 = jax.random.uniform(k1, (HID_F, IN_F), jnp.float32, -lim1, lim1)   # (4, 2)
    b1 = jax.random.uniform(k2, (HID_F,), jnp.float32, -lim1, lim1)        # (4,)
    w2 = jax.random.uniform(k3, (OUT_F, HID_F), jnp.float32, -lim2, lim2)  # (1, 4)
    b2 = jax.random.uniform(k4, (OUT_F,), jnp.float32, -lim2, lim2)        # (1,)
    return w1, b1, w2, b2


def _reference(x, w1, b1, w2, b2):
    h = jnp.maximum(x @ w1.T + b1, 0.0)
    return h @ w2.T + b2


if __name__ == "__main__":
    key = jax.random.PRNGKey(0)
    k_in, k_in2, k_params = jax.random.split(key, 3)

    w1, b1, w2, b2 = init_params(k_params)
    params = pack_params(w1, b1, w2, b2)          # padding hoisted: done once, not per call

    # Small XOR-style batch: (4, 2) -> single full-array block path.
    x = jax.random.uniform(k_in, (4, IN_F), jnp.float32)
    y = jax.block_until_ready(simple_nn_forward(x, params))
    assert y.shape == (4, 1)
    assert jnp.allclose(y, _reference(x, w1, b1, w2, b2), atol=1e-5), "mismatch (B=4)"

    # Larger batch exercising the tiled, ragged-edge grid path (2 parallel steps).
    x2 = jax.random.uniform(k_in2, (300, IN_F), jnp.float32)
    y2 = jax.block_until_ready(simple_nn_forward(x2, params))
    assert y2.shape == (300, 1)
    assert jnp.allclose(y2, _reference(x2, w1, b1, w2, b2), atol=1e-5), "mismatch (B=300)"

    print("KERNEL_OK")
</pallas_src>

<mosaic_0001>
module attributes {stable_mosaic.version = 11 : i64} {
  func.func @_mlp_kernel(%arg0: i32, %arg1: memref<2x4xf32, #tpu.memory_space<vmem>>, %arg2: memref<8x128xf32, #tpu.memory_space<vmem>>, %arg3: memref<1x4xf32, #tpu.memory_space<vmem>>) attributes {dimension_semantics = [#tpu.dimension_semantics<parallel>], iteration_bounds = array<i64: 1>, scalar_prefetch = 0 : i64, scratch_operands = 0 : i64, tpu.core_type = #tpu.core_type<tc>, window_params = [{transform_indices = @transform_0, window_bounds = array<i64: 2, 4>}, {pipeline_mode = #tpu.pipeline_mode<synchronous>, transform_indices = @transform_1, window_bounds = array<i64: 8, 128>}, {transform_indices = @transform_2, window_bounds = array<i64: 1, 4>}]} {
    %c0 = arith.constant 0 : index
    %c0_0 = arith.constant 0 : index
    %0 = vector.load %arg1[%c0, %c0_0] : memref<2x4xf32, #tpu.memory_space<vmem>>, vector<1x4xf32>
    %c1 = arith.constant 1 : index
    %c0_1 = arith.constant 0 : index
    %1 = vector.load %arg1[%c1, %c0_1] : memref<2x4xf32, #tpu.memory_space<vmem>>, vector<1x4xf32>
    %c0_2 = arith.constant 0 : index
    %c0_3 = arith.constant 0 : index
    %2 = vector.load %arg2[%c0_2, %c0_3] : memref<8x128xf32, #tpu.memory_space<vmem>>, vector<8x1xf32>
    %c0_4 = arith.constant 0 : index
    %c1_5 = arith.constant 1 : index
    %3 = vector.load %arg2[%c0_4, %c1_5] : memref<8x128xf32, #tpu.memory_space<vmem>>, vector<8x1xf32>
    %c0_6 = arith.constant 0 : index
    %c2 = arith.constant 2 : index
    %4 = vector.load %arg2[%c0_6, %c2] : memref<8x128xf32, #tpu.memory_space<vmem>>, vector<8x1xf32>
    %c0_7 = arith.constant 0 : index
    %c3 = arith.constant 3 : index
    %5 = vector.load %arg2[%c0_7, %c3] : memref<8x128xf32, #tpu.memory_space<vmem>>, vector<8x1xf32>
    %c0_8 = arith.constant 0 : index
    %c4 = arith.constant 4 : index
    %6 = vector.load %arg2[%c0_8, %c4] : memref<8x128xf32, #tpu.memory_space<vmem>>, vector<1x1xf32>
    %7 = vector.broadcast %2 : vector<8x1xf32> to vector<8x4xf32>
    %8 = vector.broadcast %0 : vector<1x4xf32> to vector<8x4xf32>
    %9 = arith.mulf %7, %8 : vector<8x4xf32>
    %10 = vector.broadcast %3 : vector<8x1xf32> to vector<8x4xf32>
    %11 = vector.broadcast %1 : vector<1x4xf32> to vector<8x4xf32>
    %12 = arith.mulf %10, %11 : vector<8x4xf32>
    %13 = arith.addf %9, %12 : vector<8x4xf32>
    %14 = vector.broadcast %4 : vector<8x1xf32> to vector<8x4xf32>
    %15 = arith.addf %13, %14 : vector<8x4xf32>
    %cst = arith.constant 0.000000e+00 : f32
    %16 = vector.broadcast %cst : f32 to vector<8x4xf32>
    %17 = arith.maximumf %15, %16 : vector<8x4xf32>
    %18 = vector.broadcast %5 : vector<8x1xf32> to vector<8x4xf32>
    %19 = arith.mulf %18, %17 : vector<8x4xf32>
    %cst_9 = arith.constant dense<0.000000e+00> : vector<4xf32>
    %20 = vector.multi_reduction <add>, %19, %cst_9 [0] : vector<8x4xf32> to vector<4xf32>
    %21 = vector.shape_cast %20 : vector<4xf32> to vector<1x4xf32>
    %22 = vector.broadcast %6 : vector<1x1xf32> to vector<1x4xf32>
    %23 = arith.addf %21, %22 : vector<1x4xf32>
    %c0_10 = arith.constant 0 : index
    %c0_11 = arith.constant 0 : index
    %24 = vector.load %arg3[%c0_10, %c0_11] : memref<1x4xf32, #tpu.memory_space<vmem>>, vector<1x4xf32>
    tpu.vector_store %arg3[%c0_10, %c0_11], %23 {strides = array<i32>} : memref<1x4xf32, #tpu.memory_space<vmem>>, vector<1x4xf32>,
    return
  }
  func.func @transform_0(%arg0: i32) -> (i32, i32) {
    %c0_i32 = arith.constant 0 : i32
    %c0_i32_0 = arith.constant 0 : i32
    return %c0_i32, %arg0 : i32, i32
  }
  func.func @transform_1(%arg0: i32) -> (i32, i32) {
    %c0_i32 = arith.constant 0 : i32
    %c0_i32_0 = arith.constant 0 : i32
    %c0_i32_1 = arith.constant 0 : i32
    return %c0_i32, %c0_i32_0 : i32, i32
  }
  func.func @transform_2(%arg0: i32) -> (i32, i32) {
    %c0_i32 = arith.constant 0 : i32
    %c0_i32_0 = arith.constant 0 : i32
    return %c0_i32, %arg0 : i32, i32
  }
}

</mosaic_0001>

<bundles_post_ra>
// kernel: simple_nn_forward.1
= control target key start
LH: loop header
LB: loop body
LE: loop exit
PB: predicated region body
PF: predicated region fallthrough
CT: control target
= control target key end

     0   :  { %7 = vsyncpa [#allocation3], 0  ;;  %s205_s0 = inlined_call_operand.vmem [shape: f32[2,4], index: 0, kind: input, shape index: {}]   ;;  %s206_s1 = inlined_call_operand.hbm [shape: f32[8,128], index: 1, kind: input, shape index: {}]   ;;  %s207_s2 = inlined_call_operand.hbm [shape: f32[1,4], index: 2, kind: output, shape index: {}]  }
   0x1   :  { %8 = vsyncpa [#allocation4], 0  ;;  %s153_s9 = smov [#allocation2]   ;;  %s105_s13 = scalar_lea.hbm %s206_s1, 128 }
   0x2   :  { %s17_s10 = sshll.u32 %s153_s9, 4  ;;  %p106_p0 = scmp.ne.s32.totalorder %s206_s1, %s105_s13  ;;  %s18_s10 = int_to_ptr.vmem [resolvable:$true] %s17_s10 }
   0x3   :  { %p109_p1 = scmp.lt.u32.totalorder %s105_s13, %s206_s1 }
   0x5   :  { %p111_p2 = pnand %p109_p1, %p106_p0 }
   0x7   :  { %114 = shalt.err (!%p111_p2)
}
   0x8   :  { %s115_s18 = scalar_lea.vmem %s18_s10, 128  ;;  %p120_p4 = scmp.lt.s32.totalorder %s18_s10, %s18_s10 }
   0x9   :  { %p116_p3 = scmp.ne.s32.totalorder %s18_s10, %s115_s18  ;;  %p121_p5 = scmp.lt.s32.totalorder %s115_s18, %s115_s18 }
   0xb   :  { %p122_p6 = por %p121_p5, %p120_p4 }
   0xd   :  { %p123_p7 = pnand %p122_p6, %p116_p3 }
   0xf   :  { %126 = shalt.err (!%p123_p7)
}
  0x10   :  { %20 = dma.hbm_to_vmem [thread:$0]  %s206_s1, 128, %s18_s10, [#allocation3]  }
  0x11   :  { %149 = dma.done.wait [#allocation3], 128  }
  0x12   :  { %150 = vsyncadd [#allocation3], 4294967168  ;;  %v154_v0 = vmov 0   ;;  %v155_v1 = vmov 2   ;;  %v26_v2 = vld [vmem:[#allocation2] sm:$0xff]  ;;  %v156_v3 = vmov 1  }
  0x13   :  { %99 = vset.pattern.permute.xlu0 %v154_v0  ;;  %101 = vset.pattern.permute.xlu1 %v155_v1  ;;  %v157_v4 = vmov 3   ;;  %v27_v5 = vld [vmem:[#allocation2] sm:$0x1]  ;;  %v158_v6 = vmov 4   ;;  %v91_v9 = vld [vmem:[%s205_s0 + $0x1] ss:$0 sm:$0xff] }
  0x14   :  { %30 = vperm.xlu0 %99, %v26_v2   ;;  %49 = vperm.xlu1 %101, %v26_v2   ;;  %v90_v8 = vld [vmem:[%s205_s0] ss:$0 sm:$0xff]  ;;  %vm59_vm0 = vcmask 31744   ;;  %s159_s24 = smov [#allocation5]   ;;  %vm73_vm1 = vcmask 24576  }
  0x15   :  { %s81_s25 = sshll.u32 %s159_s24, 4  ;;  %s82_s25 = int_to_ptr.vmem [resolvable:$true] %s81_s25 }
  0x16   :  { %s127_s0 = scalar_lea.vmem %s82_s25, 16  ;;  %s131_s26 = scalar_lea.vmem %s82_s25, 32 }
  0x17   :  { %p128_p8 = scmp.ne.s32.totalorder %s82_s25, %s127_s0  ;;  %p132_p9 = scmp.lt.s32.totalorder %s82_s25, %s82_s25 }
  0x18   :  { %100 = vset.pattern.permute.xlu0 %v156_v3  ;;  %102 = vset.pattern.permute.xlu1 %v157_v4  ;;  %p133_p10 = scmp.lt.s32.totalorder %s131_s26, %s127_s0 }
  0x19   :  { %39 = vperm.xlu0 %100, %v26_v2   ;;  %55 = vperm.xlu1 %102, %v26_v2  }
  0x1a   :  { %p134_p11 = por %p133_p10, %p132_p9 }
  0x1c   :  { %p135_p12 = pnand %p134_p11, %p128_p8 }
  0x1d   :  { %103 = vset.pattern.permute.xlu1 %v158_v6  ;;  %104 = vset.pattern.permute.xlu0 %v158_v6 }
  0x1e   :  { %69 = vperm.xlu1 %103, %v27_v5  }
  0x93   :  { %v31_v7 = vpop.permute.xlu0 %30  ;;  %v50_v11 = vpop.permute.xlu1 %49 }
  0x94   :  { %v37_v12 = vmul.f32 %v90_v8, %v31_v7 }
  0x98   :  { %v40_v10 = vpop.permute.xlu0 %39  ;;  %v56_v16 = vpop.permute.xlu1 %55 }
  0x99   :  { %v46_v13 = vmul.f32 %v91_v9, %v40_v10 }
  0x9b   :  { %v47_v14 = vadd.f32 %v46_v13, %v37_v12 }
  0x9d   :  { %v52_v15 = vadd.f32 %v50_v11, %v47_v14  ;;  %v70_v25 = vpop.permute.xlu1 %69 }
  0x9f   :  { %v53_v17 = vmax.f32 %v52_v15, 0.0 }
  0xa1   :  { %v58_v18 = vmul.f32 %v56_v16, %v53_v17 }
  0xa3   :  { %v60_v19 = vsel %vm59_vm0, %v58_v18, 0.0 }
  0xa4   :  { %v61_v20 = vrot.slane %v60_v19, 4 }
  0xa6   :  { %v62_v21 = vadd.f32 %v61_v20, %v60_v19 }
  0xa8   :  { %v63_v22 = vrot.slane %v62_v21, 2 }
  0xaa   :  { %v64_v23 = vadd.f32 %v63_v22, %v62_v21 }
  0xac   :  { %v65_v24 = vrot.slane %v64_v23, 1 }
  0xae   :  { %v66_v26 = vadd.f32 %v65_v24, %v64_v23 }
  0xb0   :  { %v72_v27 = vadd.f32 %v70_v25, %v66_v26 }
  0xb2   :  { %74 = vst.msk [vmem:[#allocation5] sm:$0x1] %vm73_vm1, %v72_v27 }
  0xb3   :  { %138 = shalt.err (!%p135_p12)
}
  0xb4   :  { %s139_s29 = scalar_lea.hbm %s207_s2, 16 }
  0xb5   :  { %p140_p13 = scmp.ne.s32.totalorder %s207_s2, %s139_s29  ;;  %p143_p0 = scmp.lt.u32.totalorder %s139_s29, %s207_s2 }
  0xb7   :  { %p145_p1 = pnand %p143_p0, %p140_p13 }
  0xb9   :  { %148 = shalt.err (!%p145_p1)
}
  0xba   :  { %84 = dma.vmem_to_hbm [thread:$0]  %s82_s25, 16, %s207_s2, [#allocation4]  }
  0xbb   :  { %151 = dma.done.wait [#allocation4], 16  }
  0xbc   :  { %152 = vsyncadd [#allocation4], 4294967280 }
  0xbd   :  { %88 = vsyncpa [#allocation3], 1 }
  0xbe   :  { %89 = vsyncpa [#allocation4], 1 }

</bundles_post_ra>
